<compile_context>
chip_gen: v5e
topology: v5e:2x2
jax: 0.10.0
libtpu: 0.0.40
codegen_flags: <defaults>
</compile_context>

<pallas_src>
import functools

import jax
import jax.numpy as jnp
from jax.experimental import pallas as pl
from jax.experimental.pallas import tpu as pltpu


def _round_up(x, m):
    return ((x + m - 1) // m) * m


def _fused_conv_kernel(w_ref, b_ref, x_ref, out_ref, *, kh, kw, width):
    """One batch element: stride-1 'valid' conv as kh*kw shifted matmuls.

    w_ref:   (KH*KW, Cout, Cin_pad)  -- VMEM-resident taps, w_ref[i*kw+j] = W[:, :, i, j]
    b_ref:   (Cout, 1)               -- VMEM-resident bias column
    x_ref:   (Cin_pad, L_pad)        -- this batch element's image, flattened H*W + zero pad
    out_ref: (Cout, MP)              -- full-width stride-1 output, MP = round_up(OH1*W, 128)
    """
    cout, mp = out_ref.shape
    acc = jnp.zeros((cout, mp), jnp.float32)
    # Static (unrolled) loop over the kh*kw taps: each tap is a lane-shifted
    # slice of the flattened image feeding a small MXU matmul.
    for i in range(kh):
        for j in range(kw):
            off = i * width + j
            x_shift = x_ref[:, off:off + mp]            # (Cin_pad, MP) lane shift only
            acc = acc + jnp.dot(w_ref[i * kw + j], x_shift,
                                preferred_element_type=jnp.float32)
    out_ref[...] = (acc + b_ref[...]).astype(out_ref.dtype)


@functools.partial(jax.jit, static_argnames=("stride",))
def lenet_conv2d(x_nchw, weight, bias, *, stride):
    """Forward pass of LeNetConv2d.

    x_nchw: (N, Cin, H, W)  float32
    weight: (Cout, Cin, KH, KW)  float32 (PyTorch conv weight layout)
    bias:   (Cout,) float32
    returns (N, Cout, OH, OW) float32
    """
    n, cin, h, w = x_nchw.shape
    cout, cin_w, kh, kw = weight.shape
    assert cin == cin_w
    assert h >= kh and w >= kw

    oh1 = h - kh + 1                       # stride-1 output height (what the kernel computes)
    oh = (h - kh) // stride + 1
    ow = (w - kw) // stride + 1

    m = oh1 * w                            # stride-1, full-width output length (lane axis)
    mp = _round_up(m, 128)                 # lane-dense output width
    max_off = (kh - 1) * w + (kw - 1)      # largest tap offset
    l_pad = _round_up(max_off + mp, 128)   # every shifted slice [off, off+mp) stays in bounds
    cin_pad = _round_up(cin, 8)            # sublane-align the contraction dim (zero pad)

    # Free reshape NCHW -> (N, Cin, H*W); single cheap zero-pad (channels + lanes).
    x_flat = x_nchw.reshape(n, cin, h * w)
    x_flat = jnp.pad(x_flat, ((0, 0), (0, cin_pad - cin), (0, l_pad - h * w)))

    # Weight -> (KH*KW, Cout, Cin_pad): w_taps[i*kw + j] == weight[:, :, i, j].
    w_taps = jnp.transpose(weight, (2, 3, 0, 1)).reshape(kh * kw, cout, cin)
    w_taps = jnp.pad(w_taps, ((0, 0), (0, 0), (0, cin_pad - cin)))
    bias_col = bias.reshape(cout, 1)

    kernel = functools.partial(_fused_conv_kernel, kh=kh, kw=kw, width=w)

    out = pl.pallas_call(
        kernel,
        out_shape=jax.ShapeDtypeStruct((n, cout, mp), x_nchw.dtype),
        grid=(n,),
        in_specs=[
            # taps / bias stay resident in VMEM across the whole grid
            pl.BlockSpec((kh * kw, cout, cin_pad), lambda b: (0, 0, 0)),
            pl.BlockSpec((cout, 1), lambda b: (0, 0)),
            # one batch element's flattened image per grid step (pipelined)
            pl.BlockSpec((pl.Squeezed(), cin_pad, l_pad), lambda b: (b, 0, 0)),
        ],
        out_specs=pl.BlockSpec((pl.Squeezed(), cout, mp), lambda b: (b, 0, 0)),
        compiler_params=pltpu.CompilerParams(
            dimension_semantics=("parallel",)),
    )(w_taps, bias_col, x_flat)

    # stride-1 full-width result -> crop valid columns, then subsample for stride.
    full = out[:, :, :m].reshape(n, cout, oh1, w)
    return full[:, :, ::stride, ::stride][:, :, :oh, :ow]


def init_lenet_conv2d_params(key, in_channels, out_channels, kernel_size):
    """Deterministic init matching the PyTorch module:
    weight ~ U(-2.4/f_in, 2.4/f_in) with f_in = k*k*in_channels,
    bias   ~ U(-1/sqrt(fan_in), 1/sqrt(fan_in))  (nn.Conv2d default).
    """
    kw_key, b_key = jax.random.split(key)
    f_in = kernel_size * kernel_size * in_channels
    bound_w = 2.4 / f_in
    weight = jax.random.uniform(
        kw_key, (out_channels, in_channels, kernel_size, kernel_size),
        minval=-bound_w, maxval=bound_w, dtype=jnp.float32)
    bound_b = 1.0 / jnp.sqrt(float(f_in))
    bias = jax.random.uniform(
        b_key, (out_channels,), minval=-bound_b, maxval=bound_b,
        dtype=jnp.float32)
    return weight, bias


if __name__ == "__main__":
    # Small LeNet-like config: Conv2d(4 -> 6, kernel_size=5, stride=1)
    in_channels, out_channels, kernel_size, stride = 4, 6, 5, 1
    batch, spatial = 2, 16

    key = jax.random.PRNGKey(0)
    x_key, p_key = jax.random.split(key)
    x = jax.random.normal(x_key, (batch, in_channels, spatial, spatial),
                          dtype=jnp.float32)
    weight, bias = init_lenet_conv2d_params(p_key, in_channels, out_channels,
                                            kernel_size)

    y = lenet_conv2d(x, weight, bias, stride=stride)
    jax.block_until_ready(y)

    # Cross-check against XLA's conv for correctness.
    y_ref = jax.lax.conv_general_dilated(
        x, weight, window_strides=(stride, stride), padding="VALID",
        dimension_numbers=("NCHW", "OIHW", "NCHW")) + bias.reshape(1, -1, 1, 1)
    assert y.shape == y_ref.shape
    assert jnp.allclose(y, y_ref, atol=1e-3, rtol=1e-3)

    print("KERNEL_OK")
</pallas_src>

<mosaic_0001>
module attributes {stable_mosaic.version = 11 : i64} {
  func.func @_fused_conv_kernel(%arg0: i32, %arg1: memref<25x6x8xf32, #tpu.memory_space<vmem>>, %arg2: memref<6x1xf32, #tpu.memory_space<vmem>>, %arg3: memref<1x8x384xf32, #tpu.memory_space<vmem>>, %arg4: memref<1x6x256xf32, #tpu.memory_space<vmem>>) attributes {dimension_semantics = [#tpu.dimension_semantics<parallel>], iteration_bounds = array<i64: 2>, scalar_prefetch = 0 : i64, scratch_operands = 0 : i64, tpu.core_type = #tpu.core_type<tc>, window_params = [{pipeline_mode = #tpu.pipeline_mode<synchronous>, transform_indices = @transform_0, window_bounds = array<i64: 25, 6, 8>}, {pipeline_mode = #tpu.pipeline_mode<synchronous>, transform_indices = @transform_1, window_bounds = array<i64: 6, 1>}, {transform_indices = @transform_2, window_bounds = array<i64: 1, 8, 384>}, {transform_indices = @transform_3, window_bounds = array<i64: 1, 6, 256>}]} {
    %cst = arith.constant 0.000000e+00 : f32
    %0 = vector.broadcast %cst : f32 to vector<6x256xf32>
    %c0 = arith.constant 0 : index
    %c0_0 = arith.constant 0 : index
    %c0_1 = arith.constant 0 : index
    %1 = vector.load %arg3[%c0, %c0_0, %c0_1] : memref<1x8x384xf32, #tpu.memory_space<vmem>>, vector<1x8x256xf32>
    %2 = vector.shape_cast %1 : vector<1x8x256xf32> to vector<8x256xf32>
    %c0_2 = arith.constant 0 : index
    %c0_3 = arith.constant 0 : index
    %c0_4 = arith.constant 0 : index
    %3 = vector.load %arg1[%c0_2, %c0_3, %c0_4] : memref<25x6x8xf32, #tpu.memory_space<vmem>>, vector<1x6x8xf32>
    %4 = vector.shape_cast %3 : vector<1x6x8xf32> to vector<6x8xf32>
    %cst_5 = arith.constant dense<0.000000e+00> : vector<6x256xf32>
    %5 = tpu.matmul %4, %2, %cst_5 {dimension_numbers = #tpu.dot_dimension_numbers<[1], [0], [0], [1], [0, 0, 1, 1], [], []>} : vector<6x8xf32>, vector<8x256xf32>, vector<6x256xf32> -> vector<6x256xf32>
    %6 = arith.addf %0, %5 : vector<6x256xf32>
    %c0_6 = arith.constant 0 : index
    %c0_7 = arith.constant 0 : index
    %c1 = arith.constant 1 : index
    %7 = vector.load %arg3[%c0_6, %c0_7, %c1] : memref<1x8x384xf32, #tpu.memory_space<vmem>>, vector<1x8x256xf32>
    %8 = vector.shape_cast %7 : vector<1x8x256xf32> to vector<8x256xf32>
    %c1_8 = arith.constant 1 : index
    %c0_9 = arith.constant 0 : index
    %c0_10 = arith.constant 0 : index
    %9 = vector.load %arg1[%c1_8, %c0_9, %c0_10] : memref<25x6x8xf32, #tpu.memory_space<vmem>>, vector<1x6x8xf32>
    %10 = vector.shape_cast %9 : vector<1x6x8xf32> to vector<6x8xf32>
    %cst_11 = arith.constant dense<0.000000e+00> : vector<6x256xf32>
    %11 = tpu.matmul %10, %8, %cst_11 {dimension_numbers = #tpu.dot_dimension_numbers<[1], [0], [0], [1], [0, 0, 1, 1], [], []>} : vector<6x8xf32>, vector<8x256xf32>, vector<6x256xf32> -> vector<6x256xf32>
    %12 = arith.addf %6, %11 : vector<6x256xf32>
    %c0_12 = arith.constant 0 : index
    %c0_13 = arith.constant 0 : index
    %c2 = arith.constant 2 : index
    %13 = vector.load %arg3[%c0_12, %c0_13, %c2] : memref<1x8x384xf32, #tpu.memory_space<vmem>>, vector<1x8x256xf32>
    %14 = vector.shape_cast %13 : vector<1x8x256xf32> to vector<8x256xf32>
    %c2_14 = arith.constant 2 : index
    %c0_15 = arith.constant 0 : index
    %c0_16 = arith.constant 0 : index
    %15 = vector.load %arg1[%c2_14, %c0_15, %c0_16] : memref<25x6x8xf32, #tpu.memory_space<vmem>>, vector<1x6x8xf32>
    %16 = vector.shape_cast %15 : vector<1x6x8xf32> to vector<6x8xf32>
    %cst_17 = arith.constant dense<0.000000e+00> : vector<6x256xf32>
    %17 = tpu.matmul %16, %14, %cst_17 {dimension_numbers = #tpu.dot_dimension_numbers<[1], [0], [0], [1], [0, 0, 1, 1], [], []>} : vector<6x8xf32>, vector<8x256xf32>, vector<6x256xf32> -> vector<6x256xf32>
    %18 = arith.addf %12, %17 : vector<6x256xf32>
    %c0_18 = arith.constant 0 : index
    %c0_19 = arith.constant 0 : index
    %c3 = arith.constant 3 : index
    %19 = vector.load %arg3[%c0_18, %c0_19, %c3] : memref<1x8x384xf32, #tpu.memory_space<vmem>>, vector<1x8x256xf32>
    %20 = vector.shape_cast %19 : vector<1x8x256xf32> to vector<8x256xf32>
    %c3_20 = arith.constant 3 : index
    %c0_21 = arith.constant 0 : index
    %c0_22 = arith.constant 0 : index
    %21 = vector.load %arg1[%c3_20, %c0_21, %c0_22] : memref<25x6x8xf32, #tpu.memory_space<vmem>>, vector<1x6x8xf32>
    %22 = vector.shape_cast %21 : vector<1x6x8xf32> to vector<6x8xf32>
    %cst_23 = arith.constant dense<0.000000e+00> : vector<6x256xf32>
    %23 = tpu.matmul %22, %20, %cst_23 {dimension_numbers = #tpu.dot_dimension_numbers<[1], [0], [0], [1], [0, 0, 1, 1], [], []>} : vector<6x8xf32>, vector<8x256xf32>, vector<6x256xf32> -> vector<6x256xf32>
    %24 = arith.addf %18, %23 : vector<6x256xf32>
    %c0_24 = arith.constant 0 : index
    %c0_25 = arith.constant 0 : index
    %c4 = arith.constant 4 : index
    %25 = vector.load %arg3[%c0_24, %c0_25, %c4] : memref<1x8x384xf32, #tpu.memory_space<vmem>>, vector<1x8x256xf32>
    %26 = vector.shape_cast %25 : vector<1x8x256xf32> to vector<8x256xf32>
    %c4_26 = arith.constant 4 : index
    %c0_27 = arith.constant 0 : index
    %c0_28 = arith.constant 0 : index
    %27 = vector.load %arg1[%c4_26, %c0_27, %c0_28] : memref<25x6x8xf32, #tpu.memory_space<vmem>>, vector<1x6x8xf32>
    %28 = vector.shape_cast %27 : vector<1x6x8xf32> to vector<6x8xf32>
    %cst_29 = arith.constant dense<0.000000e+00> : vector<6x256xf32>
    %29 = tpu.matmul %28, %26, %cst_29 {dimension_numbers = #tpu.dot_dimension_numbers<[1], [0], [0], [1], [0, 0, 1, 1], [], []>} : vector<6x8xf32>, vector<8x256xf32>, vector<6x256xf32> -> vector<6x256xf32>
    %30 = arith.addf %24, %29 : vector<6x256xf32>
    %c0_30 = arith.constant 0 : index
    %c0_31 = arith.constant 0 : index
    %c16 = arith.constant 16 : index
    %31 = vector.load %arg3[%c0_30, %c0_31, %c16] : memref<1x8x384xf32, #tpu.memory_space<vmem>>, vector<1x8x256xf32>
    %32 = vector.shape_cast %31 : vector<1x8x256xf32> to vector<8x256xf32>
    %c5 = arith.constant 5 : index
    %c0_32 = arith.constant 0 : index
    %c0_33 = arith.constant 0 : index
    %33 = vector.load %arg1[%c5, %c0_32, %c0_33] : memref<25x6x8xf32, #tpu.memory_space<vmem>>, vector<1x6x8xf32>
    %34 = vector.shape_cast %33 : vector<1x6x8xf32> to vector<6x8xf32>
    %cst_34 = arith.constant dense<0.000000e+00> : vector<6x256xf32>
    %35 = tpu.matmul %34, %32, %cst_34 {dimension_numbers = #tpu.dot_dimension_numbers<[1], [0], [0], [1], [0, 0, 1, 1], [], []>} : vector<6x8xf32>, vector<8x256xf32>, vector<6x256xf32> -> vector<6x256xf32>
    %36 = arith.addf %30, %35 : vector<6x256xf32>
    %c0_35 = arith.constant 0 : index
    %c0_36 = arith.constant 0 : index
    %c17 = arith.constant 17 : index
    %37 = vector.load %arg3[%c0_35, %c0_36, %c17] : memref<1x8x384xf32, #tpu.memory_space<vmem>>, vector<1x8x256xf32>
    %38 = vector.shape_cast %37 : vector<1x8x256xf32> to vector<8x256xf32>
    %c6 = arith.constant 6 : index
    %c0_37 = arith.constant 0 : index
    %c0_38 = arith.constant 0 : index
    %39 = vector.load %arg1[%c6, %c0_37, %c0_38] : memref<25x6x8xf32, #tpu.memory_space<vmem>>, vector<1x6x8xf32>
    %40 = vector.shape_cast %39 : vector<1x6x8xf32> to vector<6x8xf32>
    %cst_39 = arith.constant dense<0.000000e+00> : vector<6x256xf32>
    %41 = tpu.matmul %40, %38, %cst_39 {dimension_numbers = #tpu.dot_dimension_numbers<[1], [0], [0], [1], [0, 0, 1, 1], [], []>} : vector<6x8xf32>, vector<8x256xf32>, vector<6x256xf32> -> vector<6x256xf32>
    %42 = arith.addf %36, %41 : vector<6x256xf32>
    %c0_40 = arith.constant 0 : index
    %c0_41 = arith.constant 0 : index
    %c18 = arith.constant 18 : index
    %43 = vector.load %arg3[%c0_40, %c0_41, %c18] : memref<1x8x384xf32, #tpu.memory_space<vmem>>, vector<1x8x256xf32>
    %44 = vector.shape_cast %43 : vector<1x8x256xf32> to vector<8x256xf32>
    %c7 = arith.constant 7 : index
    %c0_42 = arith.constant 0 : index
    %c0_43 = arith.constant 0 : index
    %45 = vector.load %arg1[%c7, %c0_42, %c0_43] : memref<25x6x8xf32, #tpu.memory_space<vmem>>, vector<1x6x8xf32>
    %46 = vector.shape_cast %45 : vector<1x6x8xf32> to vector<6x8xf32>
    %cst_44 = arith.constant dense<0.000000e+00> : vector<6x256xf32>
    %47 = tpu.matmul %46, %44, %cst_44 {dimension_numbers = #tpu.dot_dimension_numbers<[1], [0], [0], [1], [0, 0, 1, 1], [], []>} : vector<6x8xf32>, vector<8x256xf32>, vector<6x256xf32> -> vector<6x256xf32>
    %48 = arith.addf %42, %47 : vector<6x256xf32>
    %c0_45 = arith.constant 0 : index
    %c0_46 = arith.constant 0 : index
    %c19 = arith.constant 19 : index
    %49 = vector.load %arg3[%c0_45, %c0_46, %c19] : memref<1x8x384xf32, #tpu.memory_space<vmem>>, vector<1x8x256xf32>
    %50 = vector.shape_cast %49 : vector<1x8x256xf32> to vector<8x256xf32>
    %c8 = arith.constant 8 : index
    %c0_47 = arith.constant 0 : index
    %c0_48 = arith.constant 0 : index
    %51 = vector.load %arg1[%c8, %c0_47, %c0_48] : memref<25x6x8xf32, #tpu.memory_space<vmem>>, vector<1x6x8xf32>
    %52 = vector.shape_cast %51 : vector<1x6x8xf32> to vector<6x8xf32>
    %cst_49 = arith.constant dense<0.000000e+00> : vector<6x256xf32>
    %53 = tpu.matmul %52, %50, %cst_49 {dimension_numbers = #tpu.dot_dimension_numbers<[1], [0], [0], [1], [0, 0, 1, 1], [], []>} : vector<6x8xf32>, vector<8x256xf32>, vector<6x256xf32> -> vector<6x256xf32>
    %54 = arith.addf %48, %53 : vector<6x256xf32>
    %c0_50 = arith.constant 0 : index
    %c0_51 = arith.constant 0 : index
    %c20 = arith.constant 20 : index
    %55 = vector.load %arg3[%c0_50, %c0_51, %c20] : memref<1x8x384xf32, #tpu.memory_space<vmem>>, vector<1x8x256xf32>
    %56 = vector.shape_cast %55 : vector<1x8x256xf32> to vector<8x256xf32>
    %c9 = arith.constant 9 : index
    %c0_52 = arith.constant 0 : index
    %c0_53 = arith.constant 0 : index
    %57 = vector.load %arg1[%c9, %c0_52, %c0_53] : memref<25x6x8xf32, #tpu.memory_space<vmem>>, vector<1x6x8xf32>
    %58 = vector.shape_cast %57 : vector<1x6x8xf32> to vector<6x8xf32>
    %cst_54 = arith.constant dense<0.000000e+00> : vector<6x256xf32>
    %59 = tpu.matmul %58, %56, %cst_54 {dimension_numbers = #tpu.dot_dimension_numbers<[1], [0], [0], [1], [0, 0, 1, 1], [], []>} : vector<6x8xf32>, vector<8x256xf32>, vector<6x256xf32> -> vector<6x256xf32>
    %60 = arith.addf %54, %59 : vector<6x256xf32>
    %c0_55 = arith.constant 0 : index
    %c0_56 = arith.constant 0 : index
    %c32 = arith.constant 32 : index
    %61 = vector.load %arg3[%c0_55, %c0_56, %c32] : memref<1x8x384xf32, #tpu.memory_space<vmem>>, vector<1x8x256xf32>
    %62 = vector.shape_cast %61 : vector<1x8x256xf32> to vector<8x256xf32>
    %c10 = arith.constant 10 : index
    %c0_57 = arith.constant 0 : index
    %c0_58 = arith.constant 0 : index
    %63 = vector.load %arg1[%c10, %c0_57, %c0_58] : memref<25x6x8xf32, #tpu.memory_space<vmem>>, vector<1x6x8xf32>
    %64 = vector.shape_cast %63 : vector<1x6x8xf32> to vector<6x8xf32>
    %cst_59 = arith.constant dense<0.000000e+00> : vector<6x256xf32>
    %65 = tpu.matmul %64, %62, %cst_59 {dimension_numbers = #tpu.dot_dimension_numbers<[1], [0], [0], [1], [0, 0, 1, 1], [], []>} : vector<6x8xf32>, vector<8x256xf32>, vector<6x256xf32> -> vector<6x256xf32>
    %66 = arith.addf %60, %65 : vector<6x256xf32>
    %c0_60 = arith.constant 0 : index
    %c0_61 = arith.constant 0 : index
    %c33 = arith.constant 33 : index
    %67 = vector.load %arg3[%c0_60, %c0_61, %c33] : memref<1x8x384xf32, #tpu.memory_space<vmem>>, vector<1x8x256xf32>
    %68 = vector.shape_cast %67 : vector<1x8x256xf32> to vector<8x256xf32>
    %c11 = arith.constant 11 : index
    %c0_62 = arith.constant 0 : index
    %c0_63 = arith.constant 0 : index
    %69 = vector.load %arg1[%c11, %c0_62, %c0_63] : memref<25x6x8xf32, #tpu.memory_space<vmem>>, vector<1x6x8xf32>
    %70 = vector.shape_cast %69 : vector<1x6x8xf32> to vector<6x8xf32>
    %cst_64 = arith.constant dense<0.000000e+00> : vector<6x256xf32>
    %71 = tpu.matmul %70, %68, %cst_64 {dimension_numbers = #tpu.dot_dimension_numbers<[1], [0], [0], [1], [0, 0, 1, 1], [], []>} : vector<6x8xf32>, vector<8x256xf32>, vector<6x256xf32> -> vector<6x256xf32>
    %72 = arith.addf %66, %71 : vector<6x256xf32>
    %c0_65 = arith.constant 0 : index
    %c0_66 = arith.constant 0 : index
    %c34 = arith.constant 34 : index
    %73 = vector.load %arg3[%c0_65, %c0_66, %c34] : memref<1x8x384xf32, #tpu.memory_space<vmem>>, vector<1x8x256xf32>
    %74 = vector.shape_cast %73 : vector<1x8x256xf32> to vector<8x256xf32>
    %c12 = arith.constant 12 : index
    %c0_67 = arith.constant 0 : index
    %c0_68 = arith.constant 0 : index
    %75 = vector.load %arg1[%c12, %c0_67, %c0_68] : memref<25x6x8xf32, #tpu.memory_space<vmem>>, vector<1x6x8xf32>
    %76 = vector.shape_cast %75 : vector<1x6x8xf32> to vector<6x8xf32>
    %cst_69 = arith.constant dense<0.000000e+00> : vector<6x256xf32>
    %77 = tpu.matmul %76, %74, %cst_69 {dimension_numbers = #tpu.dot_dimension_numbers<[1], [0], [0], [1], [0, 0, 1, 1], [], []>} : vector<6x8xf32>, vector<8x256xf32>, vector<6x256xf32> -> vector<6x256xf32>
    %78 = arith.addf %72, %77 : vector<6x256xf32>
    %c0_70 = arith.constant 0 : index
    %c0_71 = arith.constant 0 : index
    %c35 = arith.constant 35 : index
    %79 = vector.load %arg3[%c0_70, %c0_71, %c35] : memref<1x8x384xf32, #tpu.memory_space<vmem>>, vector<1x8x256xf32>
    %80 = vector.shape_cast %79 : vector<1x8x256xf32> to vector<8x256xf32>
    %c13 = arith.constant 13 : index
    %c0_72 = arith.constant 0 : index
    %c0_73 = arith.constant 0 : index
    %81 = vector.load %arg1[%c13, %c0_72, %c0_73] : memref<25x6x8xf32, #tpu.memory_space<vmem>>, vector<1x6x8xf32>
    %82 = vector.shape_cast %81 : vector<1x6x8xf32> to vector<6x8xf32>
    %cst_74 = arith.constant dense<0.000000e+00> : vector<6x256xf32>
    %83 = tpu.matmul %82, %80, %cst_74 {dimension_numbers = #tpu.dot_dimension_numbers<[1], [0], [0], [1], [0, 0, 1, 1], [], []>} : vector<6x8xf32>, vector<8x256xf32>, vector<6x256xf32> -> vector<6x256xf32>
    %84 = arith.addf %78, %83 : vector<6x256xf32>
    %c0_75 = arith.constant 0 : index
    %c0_76 = arith.constant 0 : index
    %c36 = arith.constant 36 : index
    %85 = vector.load %arg3[%c0_75, %c0_76, %c36] : memref<1x8x384xf32, #tpu.memory_space<vmem>>, vector<1x8x256xf32>
    %86 = vector.shape_cast %85 : vector<1x8x256xf32> to vector<8x256xf32>
    %c14 = arith.constant 14 : index
    %c0_77 = arith.constant 0 : index
    %c0_78 = arith.constant 0 : index
    %87 = vector.load %arg1[%c14, %c0_77, %c0_78] : memref<25x6x8xf32, #tpu.memory_space<vmem>>, vector<1x6x8xf32>
    %88 = vector.shape_cast %87 : vector<1x6x8xf32> to vector<6x8xf32>
    %cst_79 = arith.constant dense<0.000000e+00> : vector<6x256xf32>
    %89 = tpu.matmul %88, %86, %cst_79 {dimension_numbers = #tpu.dot_dimension_numbers<[1], [0], [0], [1], [0, 0, 1, 1], [], []>} : vector<6x8xf32>, vector<8x256xf32>, vector<6x256xf32> -> vector<6x256xf32>
    %90 = arith.addf %84, %89 : vector<6x256xf32>
    %c0_80 = arith.constant 0 : index
    %c0_81 = arith.constant 0 : index
    %c48 = arith.constant 48 : index
    %91 = vector.load %arg3[%c0_80, %c0_81, %c48] : memref<1x8x384xf32, #tpu.memory_space<vmem>>, vector<1x8x256xf32>
    %92 = vector.shape_cast %91 : vector<1x8x256xf32> to vector<8x256xf32>
    %c15 = arith.constant 15 : index
    %c0_82 = arith.constant 0 : index
    %c0_83 = arith.constant 0 : index
    %93 = vector.load %arg1[%c15, %c0_82, %c0_83] : memref<25x6x8xf32, #tpu.memory_space<vmem>>, vector<1x6x8xf32>
    %94 = vector.shape_cast %93 : vector<1x6x8xf32> to vector<6x8xf32>
    %cst_84 = arith.constant dense<0.000000e+00> : vector<6x256xf32>
    %95 = tpu.matmul %94, %92, %cst_84 {dimension_numbers = #tpu.dot_dimension_numbers<[1], [0], [0], [1], [0, 0, 1, 1], [], []>} : vector<6x8xf32>, vector<8x256xf32>, vector<6x256xf32> -> vector<6x256xf32>
    %96 = arith.addf %90, %95 : vector<6x256xf32>
    %c0_85 = arith.constant 0 : index
    %c0_86 = arith.constant 0 : index
    %c49 = arith.constant 49 : index
    %97 = vector.load %arg3[%c0_85, %c0_86, %c49] : memref<1x8x384xf32, #tpu.memory_space<vmem>>, vector<1x8x256xf32>
    %98 = vector.shape_cast %97 : vector<1x8x256xf32> to vector<8x256xf32>
    %c16_87 = arith.constant 16 : index
    %c0_88 = arith.constant 0 : index
    %c0_89 = arith.constant 0 : index
    %99 = vector.load %arg1[%c16_87, %c0_88, %c0_89] : memref<25x6x8xf32, #tpu.memory_space<vmem>>, vector<1x6x8xf32>
    %100 = vector.shape_cast %99 : vector<1x6x8xf32> to vector<6x8xf32>
    %cst_90 = arith.constant dense<0.000000e+00> : vector<6x256xf32>
    %101 = tpu.matmul %100, %98, %cst_90 {dimension_numbers = #tpu.dot_dimension_numbers<[1], [0], [0], [1], [0, 0, 1, 1], [], []>} : vector<6x8xf32>, vector<8x256xf32>, vector<6x256xf32> -> vector<6x256xf32>
    %102 = arith.addf %96, %101 : vector<6x256xf32>
    %c0_91 = arith.constant 0 : index
    %c0_92 = arith.constant 0 : index
    %c50 = arith.constant 50 : index
    %103 = vector.load %arg3[%c0_91, %c0_92, %c50] : memref<1x8x384xf32, #tpu.memory_space<vmem>>, vector<1x8x256xf32>
    %104 = vector.shape_cast %103 : vector<1x8x256xf32> to vector<8x256xf32>
    %c17_93 = arith.constant 17 : index
    %c0_94 = arith.constant 0 : index
    %c0_95 = arith.constant 0 : index
    %105 = vector.load %arg1[%c17_93, %c0_94, %c0_95] : memref<25x6x8xf32, #tpu.memory_space<vmem>>, vector<1x6x8xf32>
    %106 = vector.shape_cast %105 : vector<1x6x8xf32> to vector<6x8xf32>
    %cst_96 = arith.constant dense<0.000000e+00> : vector<6x256xf32>
    %107 = tpu.matmul %106, %104, %cst_96 {dimension_numbers = #tpu.dot_dimension_numbers<[1], [0], [0], [1], [0, 0, 1, 1], [], []>} : vector<6x8xf32>, vector<8x256xf32>, vector<6x256xf32> -> vector<6x256xf32>
    %108 = arith.addf %102, %107 : vector<6x256xf32>
    %c0_97 = arith.constant 0 : index
    %c0_98 = arith.constant 0 : index
    %c51 = arith.constant 51 : index
    %109 = vector.load %arg3[%c0_97, %c0_98, %c51] : memref<1x8x384xf32, #tpu.memory_space<vmem>>, vector<1x8x256xf32>
    %110 = vector.shape_cast %109 : vector<1x8x256xf32> to vector<8x256xf32>
    %c18_99 = arith.constant 18 : index
    %c0_100 = arith.constant 0 : index
    %c0_101 = arith.constant 0 : index
    %111 = vector.load %arg1[%c18_99, %c0_100, %c0_101] : memref<25x6x8xf32, #tpu.memory_space<vmem>>, vector<1x6x8xf32>
    %112 = vector.shape_cast %111 : vector<1x6x8xf32> to vector<6x8xf32>
    %cst_102 = arith.constant dense<0.000000e+00> : vector<6x256xf32>
    %113 = tpu.matmul %112, %110, %cst_102 {dimension_numbers = #tpu.dot_dimension_numbers<[1], [0], [0], [1], [0, 0, 1, 1], [], []>} : vector<6x8xf32>, vector<8x256xf32>, vector<6x256xf32> -> vector<6x256xf32>
    %114 = arith.addf %108, %113 : vector<6x256xf32>
    %c0_103 = arith.constant 0 : index
    %c0_104 = arith.constant 0 : index
    %c52 = arith.constant 52 : index
    %115 = vector.load %arg3[%c0_103, %c0_104, %c52] : memref<1x8x384xf32, #tpu.memory_space<vmem>>, vector<1x8x256xf32>
    %116 = vector.shape_cast %115 : vector<1x8x256xf32> to vector<8x256xf32>
    %c19_105 = arith.constant 19 : index
    %c0_106 = arith.constant 0 : index
    %c0_107 = arith.constant 0 : index
    %117 = vector.load %arg1[%c19_105, %c0_106, %c0_107] : memref<25x6x8xf32, #tpu.memory_space<vmem>>, vector<1x6x8xf32>
    %118 = vector.shape_cast %117 : vector<1x6x8xf32> to vector<6x8xf32>
    %cst_108 = arith.constant dense<0.000000e+00> : vector<6x256xf32>
    %119 = tpu.matmul %118, %116, %cst_108 {dimension_numbers = #tpu.dot_dimension_numbers<[1], [0], [0], [1], [0, 0, 1, 1], [], []>} : vector<6x8xf32>, vector<8x256xf32>, vector<6x256xf32> -> vector<6x256xf32>
    %120 = arith.addf %114, %119 : vector<6x256xf32>
    %c0_109 = arith.constant 0 : index
    %c0_110 = arith.constant 0 : index
    %c64 = arith.constant 64 : index
    %121 = vector.load %arg3[%c0_109, %c0_110, %c64] : memref<1x8x384xf32, #tpu.memory_space<vmem>>, vector<1x8x256xf32>
    %122 = vector.shape_cast %121 : vector<1x8x256xf32> to vector<8x256xf32>
    %c20_111 = arith.constant 20 : index
    %c0_112 = arith.constant 0 : index
    %c0_113 = arith.constant 0 : index
    %123 = vector.load %arg1[%c20_111, %c0_112, %c0_113] : memref<25x6x8xf32, #tpu.memory_space<vmem>>, vector<1x6x8xf32>
    %124 = vector.shape_cast %123 : vector<1x6x8xf32> to vector<6x8xf32>
    %cst_114 = arith.constant dense<0.000000e+00> : vector<6x256xf32>
    %125 = tpu.matmul %124, %122, %cst_114 {dimension_numbers = #tpu.dot_dimension_numbers<[1], [0], [0], [1], [0, 0, 1, 1], [], []>} : vector<6x8xf32>, vector<8x256xf32>, vector<6x256xf32> -> vector<6x256xf32>
    %126 = arith.addf %120, %125 : vector<6x256xf32>
    %c0_115 = arith.constant 0 : index
    %c0_116 = arith.constant 0 : index
    %c65 = arith.constant 65 : index
    %127 = vector.load %arg3[%c0_115, %c0_116, %c65] : memref<1x8x384xf32, #tpu.memory_space<vmem>>, vector<1x8x256xf32>
    %128 = vector.shape_cast %127 : vector<1x8x256xf32> to vector<8x256xf32>
    %c21 = arith.constant 21 : index
    %c0_117 = arith.constant 0 : index
    %c0_118 = arith.constant 0 : index
    %129 = vector.load %arg1[%c21, %c0_117, %c0_118] : memref<25x6x8xf32, #tpu.memory_space<vmem>>, vector<1x6x8xf32>
    %130 = vector.shape_cast %129 : vector<1x6x8xf32> to vector<6x8xf32>
    %cst_119 = arith.constant dense<0.000000e+00> : vector<6x256xf32>
    %131 = tpu.matmul %130, %128, %cst_119 {dimension_numbers = #tpu.dot_dimension_numbers<[1], [0], [0], [1], [0, 0, 1, 1], [], []>} : vector<6x8xf32>, vector<8x256xf32>, vector<6x256xf32> -> vector<6x256xf32>
    %132 = arith.addf %126, %131 : vector<6x256xf32>
    %c0_120 = arith.constant 0 : index
    %c0_121 = arith.constant 0 : index
    %c66 = arith.constant 66 : index
    %133 = vector.load %arg3[%c0_120, %c0_121, %c66] : memref<1x8x384xf32, #tpu.memory_space<vmem>>, vector<1x8x256xf32>
    %134 = vector.shape_cast %133 : vector<1x8x256xf32> to vector<8x256xf32>
    %c22 = arith.constant 22 : index
    %c0_122 = arith.constant 0 : index
    %c0_123 = arith.constant 0 : index
    %135 = vector.load %arg1[%c22, %c0_122, %c0_123] : memref<25x6x8xf32, #tpu.memory_space<vmem>>, vector<1x6x8xf32>
    %136 = vector.shape_cast %135 : vector<1x6x8xf32> to vector<6x8xf32>
    %cst_124 = arith.constant dense<0.000000e+00> : vector<6x256xf32>
    %137 = tpu.matmul %136, %134, %cst_124 {dimension_numbers = #tpu.dot_dimension_numbers<[1], [0], [0], [1], [0, 0, 1, 1], [], []>} : vector<6x8xf32>, vector<8x256xf32>, vector<6x256xf32> -> vector<6x256xf32>
    %138 = arith.addf %132, %137 : vector<6x256xf32>
    %c0_125 = arith.constant 0 : index
    %c0_126 = arith.constant 0 : index
    %c67 = arith.constant 67 : index
    %139 = vector.load %arg3[%c0_125, %c0_126, %c67] : memref<1x8x384xf32, #tpu.memory_space<vmem>>, vector<1x8x256xf32>
    %140 = vector.shape_cast %139 : vector<1x8x256xf32> to vector<8x256xf32>
    %c23 = arith.constant 23 : index
    %c0_127 = arith.constant 0 : index
    %c0_128 = arith.constant 0 : index
    %141 = vector.load %arg1[%c23, %c0_127, %c0_128] : memref<25x6x8xf32, #tpu.memory_space<vmem>>, vector<1x6x8xf32>
    %142 = vector.shape_cast %141 : vector<1x6x8xf32> to vector<6x8xf32>
    %cst_129 = arith.constant dense<0.000000e+00> : vector<6x256xf32>
    %143 = tpu.matmul %142, %140, %cst_129 {dimension_numbers = #tpu.dot_dimension_numbers<[1], [0], [0], [1], [0, 0, 1, 1], [], []>} : vector<6x8xf32>, vector<8x256xf32>, vector<6x256xf32> -> vector<6x256xf32>
    %144 = arith.addf %138, %143 : vector<6x256xf32>
    %c0_130 = arith.constant 0 : index
    %c0_131 = arith.constant 0 : index
    %c68 = arith.constant 68 : index
    %145 = vector.load %arg3[%c0_130, %c0_131, %c68] : memref<1x8x384xf32, #tpu.memory_space<vmem>>, vector<1x8x256xf32>
    %146 = vector.shape_cast %145 : vector<1x8x256xf32> to vector<8x256xf32>
    %c24 = arith.constant 24 : index
    %c0_132 = arith.constant 0 : index
    %c0_133 = arith.constant 0 : index
    %147 = vector.load %arg1[%c24, %c0_132, %c0_133] : memref<25x6x8xf32, #tpu.memory_space<vmem>>, vector<1x6x8xf32>
    %148 = vector.shape_cast %147 : vector<1x6x8xf32> to vector<6x8xf32>
    %cst_134 = arith.constant dense<0.000000e+00> : vector<6x256xf32>
    %149 = tpu.matmul %148, %146, %cst_134 {dimension_numbers = #tpu.dot_dimension_numbers<[1], [0], [0], [1], [0, 0, 1, 1], [], []>} : vector<6x8xf32>, vector<8x256xf32>, vector<6x256xf32> -> vector<6x256xf32>
    %150 = arith.addf %144, %149 : vector<6x256xf32>
    %c0_135 = arith.constant 0 : index
    %c0_136 = arith.constant 0 : index
    %151 = vector.load %arg2[%c0_135, %c0_136] : memref<6x1xf32, #tpu.memory_space<vmem>>, vector<6x1xf32>
    %152 = vector.broadcast %151 : vector<6x1xf32> to vector<6x256xf32>
    %153 = arith.addf %150, %152 : vector<6x256xf32>
    %c0_137 = arith.constant 0 : index
    %c0_138 = arith.constant 0 : index
    %c0_139 = arith.constant 0 : index
    %154 = vector.load %arg4[%c0_137, %c0_138, %c0_139] : memref<1x6x256xf32, #tpu.memory_space<vmem>>, vector<1x6x256xf32>
    %155 = vector.shape_cast %154 : vector<1x6x256xf32> to vector<6x256xf32>
    %156 = vector.shape_cast %153 : vector<6x256xf32> to vector<1x6x256xf32>
    tpu.vector_store %arg4[%c0_137, %c0_138, %c0_139], %156 {strides = array<i32>} : memref<1x6x256xf32, #tpu.memory_space<vmem>>, vector<1x6x256xf32>,
    return
  }
  func.func @transform_0(%arg0: i32) -> (i32, i32, i32) {
    %c0_i32 = arith.constant 0 : i32
    %c0_i32_0 = arith.constant 0 : i32
    %c0_i32_1 = arith.constant 0 : i32
    %c0_i32_2 = arith.constant 0 : i32
    return %c0_i32, %c0_i32_0, %c0_i32_1 : i32, i32, i32
  }
  func.func @transform_1(%arg0: i32) -> (i32, i32) {
    %c0_i32 = arith.constant 0 : i32
    %c0_i32_0 = arith.constant 0 : i32
    %c0_i32_1 = arith.constant 0 : i32
    return %c0_i32, %c0_i32_0 : i32, i32
  }
  func.func @transform_2(%arg0: i32) -> (i32, i32, i32) {
    %c0_i32 = arith.constant 0 : i32
    %c0_i32_0 = arith.constant 0 : i32
    %c0_i32_1 = arith.constant 0 : i32
    return %arg0, %c0_i32, %c0_i32_0 : i32, i32, i32
  }
  func.func @transform_3(%arg0: i32) -> (i32, i32, i32) {
    %c0_i32 = arith.constant 0 : i32
    %c0_i32_0 = arith.constant 0 : i32
    %c0_i32_1 = arith.constant 0 : i32
    return %arg0, %c0_i32, %c0_i32_0 : i32, i32, i32
  }
}

</mosaic_0001>

<bundles_post_ra>
// kernel: lenet_conv2d.1
= control target key start
LH: loop header
LB: loop body
LE: loop exit
PB: predicated region body
PF: predicated region fallthrough
CT: control target
= control target key end

     0   :  { %s1972_s12 = smov 0   ;;  %s2219_s0 = inlined_call_operand.vmem [shape: f32[25,6,8], index: 0, kind: input, shape index: {}]   ;;  %s2220_s1 = inlined_call_operand.vmem [shape: f32[6,1], index: 1, kind: input, shape index: {}]   ;;  %s2221_s2 = inlined_call_operand.vmem [shape: f32[2,8,384], index: 2, kind: input, shape index: {}]   ;;  %s2222_s3 = inlined_call_operand.vmem [shape: f32[2,6,256], index: 3, kind: output, shape index: {}]  }
   0x1 LB: > { %s1679_s13 = sadd.s32 4294967295, %s1925_s12   ;;  %p1683_p0 = scmp.ge.s32.totalorder %s1925_s12, 1  ;;  %s1925_s12 = sphi %s1972_s12, %s13_s12  }
   0x2   : > { %p137_p1 = scmp.lt.s32.totalorder %s1925_s12, 3 }
   0x4   : > { %p138_p2 = pnand %p1683_p0, %p137_p1 }
   0x5   : > { %p161_p3 = scmp.lt.s32.totalorder (!%p138_p2), %s1679_s13, 1  ;;  %s1927_s18 = smov (!%p138_p2), 126  }
   0x6   : > { %141 = sbr.rel (%p138_p2) target bundleno = 395 (0x18b), region = 32  ;;  %s1928_s19 = smov (!%p138_p2), 127  }
   0x7   : > { %s1929_s20 = smov (!%p138_p2), 125   ;;  %s1930_s21 = smov (!%p138_p2), 124  }
   0x8   : > { %s1931_s22 = smov (!%p138_p2), 112   ;;  %s1932_s23 = smov (!%p138_p2), 111  }
   0x9   : > { %s1933_s24 = smov (!%p138_p2), 110   ;;  %s1934_s25 = smov (!%p138_p2), 109  }
   0xa   : > { %s1935_s26 = smov (!%p138_p2), 108   ;;  %s1936_s27 = smov (!%p138_p2), 96  }
   0xb   : > { %s2224_s13 = smov (!%p161_p3, %s1679_s13), 1  ;;  %s1937_s28 = smov 95   ;;  %vm346_vm0 = vcmask 1022976   ;;  %vm193_vm1 = vcmask 64512   ;;  %v173_v8 = vld [vmem:[%s2219_s0] sm:$0x3f] }
   0xc   : > { %s1764_s14 = smul.u32 24, %s2224_s13  ;;  %s1938_s29 = smov 94   ;;  %v1695_v11 = vld [vmem:[%s2219_s0 + $0x18] sm:$0x3f]  ;;  %vm462_vm2 = vcmask 916480   ;;  %vm188_vm3 = vcmask 1039360  }
   0xd   : > { %s1939_s30 = smov 93   ;;  %s1940_s4 = smov 92   ;;  %v2050_v16 = vld [vmem:[%s2219_s0 + $0x28] sm:$0x3f]  ;;  %vm288_vm4 = vcmask 1031168   ;;  %vm404_vm5 = vcmask 1014784  }
   0xe   : > { %s165_s17 = scalar_lea.vmem %s2221_s2, %s1764_s14  ;;  %s1941_s5 = smov 80   ;;  %v1687_v26 = vld [vmem:[%s2219_s0 + $0x8] sm:$0x3f]  ;;  %v1692_v32 = vld [vmem:[%s2219_s0 + $0x10] sm:$0x3f]  ;;  %vm636_vm6 = vcmask 891904  }
   0xf   : > { %v174_v0 = vld [vmem:[%s165_s17] sm:$0xff]  ;;  %v175_v1 = vld [vmem:[%s165_s17 + $0x8] sm:$0xff]  ;;  %v1991_v3 = vld [vmem:[%s165_s17 + $0x10] sm:$0xff]  ;;  %s1942_s6 = smov 79   ;;  %s1943_s7 = smov 78   ;;  %vm520_vm7 = vcmask 908288  }
  0x10   : > { %v1986_v2 = vpack.i.bf16 %v175_v1, %v174_v0  ;;  %255 = vmatpush.msra.mxu2 %v174_v0  ;;  %275 = vmatpush.msra.mxu3 %v175_v1  ;;  %s1944_s8 = smov 77   ;;  %s1945_s11 = smov 76   ;;  %v1698_v40 = vld [vmem:[%s2219_s0 + $0x20] sm:$0x3f]  ;;  %v1704_v52 = vld [vmem:[%s2219_s0 + $0x30] sm:$0x3f] }
  0x11   : > { %1691 = vmatmul.msk.f32.vlgmr.msra.gmra.mxu3 %vm193_vm1, %v173_v8  ;;  %s1946_s14 = smov 64   ;;  %1690 = vmatmul.msk.f32.vlgmr.msra.gmra.mxu2 %vm193_vm1, %v173_v8  ;;  %s1947_s17 = smov 63   ;;  %vm578_vm8 = vcmask 900096   ;;  %v1707_v58 = vld [vmem:[%s2219_s0 + $0x38] sm:$0x3f]  ;;  %vm694_vm9 = vcmask 883712  }
  0x12   : > { %1804 = vrot.lane.b32.xlu1 %v1986_v2, %s1927_s18  ;;  %1799 = vrot.lane.b32.xlu0 %v1986_v2, %s1928_s19  ;;  %v1710_v61 = vld [vmem:[%s2219_s0 + $0x40] sm:$0x3f]  ;;  %vm810_vm10 = vcmask 777216   ;;  %vm752_vm11 = vcmask 785408   ;;  %vm868_vm12 = vcmask 769024   ;;  %vm984_vm13 = vcmask 752640  }
  0x13   : > { %1809 = vrot.lane.b32.xlu2 %v1986_v2, %s1929_s20  ;;  %vm926_vm14 = vcmask 760832   ;;  %vm1042_vm15 = vcmask 654336  }
  0x1a   : > { %286 = vrot.lane.b32.xlu1 %v1991_v3, %s1927_s18  ;;  %186 = vrot.lane.b32.xlu0 %v1991_v3, %s1928_s19  ;;  %s1763_s19 = sshll.u32 %s2224_s13, 4 }
  0x1b   : > { %344 = vrot.lane.b32.xlu2 %v1991_v3, %s1929_s20  ;;  %s1948_s20 = smov 62  }
  0x22   : > { %402 = vrot.lane.b32.xlu1 %v1991_v3, %s1930_s21  ;;  %1814 = vrot.lane.b32.xlu0 %v1986_v2, %s1930_s21  ;;  %s1949_s21 = smov 61  }
  0x23   : > { %1819 = vrot.lane.b32.xlu2 %v1986_v2, %s1931_s22 }
  0x2a   : > { %1824 = vrot.lane.b32.xlu1 %v1986_v2, %s1932_s23  ;;  %460 = vrot.lane.b32.xlu0 %v1991_v3, %s1931_s22  ;;  %s170_s22 = scalar_lea.vmem %s2222_s3, %s1763_s19 }
  0x2b   : > { %518 = vrot.lane.b32.xlu2 %v1991_v3, %s1932_s23 }
  0x32   : > { %576 = vrot.lane.b32.xlu1 %v1991_v3, %s1933_s24  ;;  %1829 = vrot.lane.b32.xlu0 %v1986_v2, %s1933_s24  ;;  %s1950_s24 = smov 60  }
  0x33   : > { %1834 = vrot.lane.b32.xlu2 %v1986_v2, %s1934_s25 }
  0x3a   : > { %1839 = vrot.lane.b32.xlu1 %v1986_v2, %s1935_s26  ;;  %634 = vrot.lane.b32.xlu0 %v1991_v3, %s1934_s25 }
  0x3b   : > { %692 = vrot.lane.b32.xlu2 %v1991_v3, %s1935_s26 }
  0x42   : > { %750 = vrot.lane.b32.xlu1 %v1991_v3, %s1936_s27  ;;  %1844 = vrot.lane.b32.xlu0 %v1986_v2, %s1936_s27 }
  0x43   : > { %1849 = vrot.lane.b32.xlu2 %v1986_v2, %s1937_s28 }
  0x4a   : > { %1854 = vrot.lane.b32.xlu1 %v1986_v2, %s1938_s29  ;;  %808 = vrot.lane.b32.xlu0 %v1991_v3, %s1937_s28 }
  0x4b   : > { %866 = vrot.lane.b32.xlu2 %v1991_v3, %s1938_s29 }
  0x52   : > { %924 = vrot.lane.b32.xlu1 %v1991_v3, %s1939_s30  ;;  %1859 = vrot.lane.b32.xlu0 %v1986_v2, %s1939_s30 }
  0x53   : > { %1864 = vrot.lane.b32.xlu2 %v1986_v2, %s1940_s4 }
  0x5a   : > { %1869 = vrot.lane.b32.xlu1 %v1986_v2, %s1941_s5  ;;  %982 = vrot.lane.b32.xlu0 %v1991_v3, %s1940_s4 }
  0x5b   : > { %1040 = vrot.lane.b32.xlu2 %v1991_v3, %s1941_s5 }
  0x62   : > { %1098 = vrot.lane.b32.xlu1 %v1991_v3, %s1942_s6  ;;  %1874 = vrot.lane.b32.xlu0 %v1986_v2, %s1942_s6 }
  0x63   : > { %1879 = vrot.lane.b32.xlu2 %v1986_v2, %s1943_s7 }
  0x6a   : > { %1884 = vrot.lane.b32.xlu1 %v1986_v2, %s1944_s8  ;;  %1156 = vrot.lane.b32.xlu0 %v1991_v3, %s1943_s7 }
  0x6b   : > { %1214 = vrot.lane.b32.xlu2 %v1991_v3, %s1944_s8 }
  0x6d   : > { %v1810_v4 = vpop.permute.xlu2 %1809 }
  0x6e   : > { %v1812_v5 = vunpack.i.h.bf16 %v1810_v4  ;;  %v1811_v6 = vunpack.i.l.bf16 %v1810_v4 }
  0x70   : > { %v347_v7 = vsel %vm346_vm0, %v1811_v6, %v1812_v5  ;;  %v1713_v6 = vld [vmem:[%s2219_s0 + $0x48] sm:$0x3f] }
  0x71   : > { %369 = vmatpush.msrb.mxu2 %v347_v7 }
  0x72   : > { %1272 = vrot.lane.b32.xlu1 %v1991_v3, %s1945_s11  ;;  %1889 = vrot.lane.b32.xlu0 %v1986_v2, %s1945_s11 }
  0x73   : > { %1894 = vrot.lane.b32.xlu2 %v1986_v2, %s1946_s14  ;;  %1696 = vmatmul.msk.f32.vlgmr.msrb.gmra.mxu2 %vm193_vm1, %v1695_v11 }
  0x75   : > { %v345_v9 = vpop.permute.xlu2 %344 }
  0x76   : > { %v348_v10 = vsel %vm346_vm0, %v1812_v5, %v345_v9  ;;  %vm1158_vm0 = vcmask 637952  }
  0x77   : > { %389 = vmatpush.msrb.mxu3 %v348_v10 }
  0x78   : > { %1697 = vmatmul.msk.f32.vlgmr.msrb.gmra.mxu3 %vm193_vm1, %v1695_v11 }
  0x7a   : > { %1899 = vrot.lane.b32.xlu1 %v1986_v2, %s1947_s17  ;;  %1330 = vrot.lane.b32.xlu0 %v1991_v3, %s1946_s14 }
  0x7b   : > { %1388 = vrot.lane.b32.xlu2 %v1991_v3, %s1947_s17 }
  0x7d   : > { %v2042_v12 = vpop.permute.xlu2 %1819 }
  0x7e   : > { %v1822_v13 = vunpack.i.h.bf16 %v2042_v12  ;;  %v1821_v14 = vunpack.i.l.bf16 %v2042_v12 }
  0x80   : > { %v463_v15 = vsel %vm462_vm2, %v1821_v14, %v1822_v13 }
  0x81   : > { %485 = vmatpush.msra.mxu2 %v463_v15  ;;  %v1716_v15 = vld [vmem:[%s2219_s0 + $0x50] sm:$0x3f] }
  0x82   : > { %1446 = vrot.lane.b32.xlu1 %v1991_v3, %s1948_s20  ;;  %1904 = vrot.lane.b32.xlu0 %v1986_v2, %s1948_s20 }
  0x83   : > { %1909 = vrot.lane.b32.xlu2 %v1986_v2, %s1949_s21  ;;  %1702 = vmatmul.msk.f32.vlgmr.msra.gmra.mxu2 %vm193_vm1, %v2050_v16 }
  0x84   : > { %v1805_v17 = vpop.permute.xlu1 %1804  ;;  %v1800_v18 = vpop.permute.xlu0 %1799 }
  0x85   : > { %v1807_v19 = vunpack.i.h.bf16 %v1805_v17  ;;  %v1806_v20 = vunpack.i.l.bf16 %v1805_v17  ;;  %v1802_v21 = vunpack.i.h.bf16 %v1800_v18  ;;  %v1801_v22 = vunpack.i.l.bf16 %v1800_v18  ;;  %v519_v23 = vpop.permute.xlu2 %518 }
  0x87   : > { %v189_v24 = vsel %vm188_vm3, %v1801_v22, %v1802_v21  ;;  %v289_v25 = vsel %vm288_vm4, %v1806_v20, %v1807_v19 }
  0x88   : > { %212 = vmatpush.msra.mxu0 %v189_v24 }
  0x89   : > { %1688 = vmatmul.msk.f32.vlgmr.msra.gmra.mxu0 %vm193_vm1, %v1687_v26 }
  0x8a   : > { %311 = vmatpush.msrb.mxu0 %v289_v25  ;;  %1914 = vrot.lane.b32.xlu1 %v1986_v2, %s1950_s24 }
  0x8b   : > { %1504 = vrot.lane.b32.xlu0 %v1991_v3, %s1949_s21  ;;  %1562 = vrot.lane.b32.xlu2 %v1991_v3, %s1950_s24 }
  0x8c   : > { %v287_v27 = vpop.permute.xlu1 %286  ;;  %v187_v28 = vpop.permute.xlu0 %186 }
  0x8d   : > { %v190_v29 = vsel %vm188_vm3, %v1802_v21, %v187_v28  ;;  %v290_v30 = vsel %vm288_vm4, %v1807_v19, %v287_v27  ;;  %v2068_v31 = vpop.permute.xlu2 %1834  ;;  %vm1216_vm3 = vcmask 629760   ;;  %vm1332_vm4 = vcmask 523264  }
  0x8e   : > { %232 = vmatpush.msra.mxu1 %v190_v29  ;;  %v1837_v41 = vunpack.i.h.bf16 %v2068_v31  ;;  %v1836_v42 = vunpack.i.l.bf16 %v2068_v31 }
  0x8f   : > { %1689 = vmatmul.msk.f32.vlgmr.msra.gmra.mxu1 %vm193_vm1, %v1687_v26  ;;  %v1722_v26 = vld [vmem:[%s2219_s0 + $0x60] sm:$0x3f] }
  0x90   : > { %331 = vmatpush.msrb.mxu1 %v290_v30  ;;  %v637_v49 = vsel %vm636_vm6, %v1836_v42, %v1837_v41 }
  0x91   : > { %1693 = vmatmul.msk.f32.vlgmr.msrb.gmra.mxu0 %vm193_vm1, %v1692_v32 }
  0x94   : > { %v403_v33 = vpop.permute.xlu1 %402  ;;  %v1815_v34 = vpop.permute.xlu0 %1814 }
  0x95   : > { %v1817_v35 = vunpack.i.h.bf16 %v1815_v34  ;;  %v1816_v36 = vunpack.i.l.bf16 %v1815_v34  ;;  %v693_v37 = vpop.permute.xlu2 %692 }
  0x97   : > { %v405_v38 = vsel %vm404_vm5, %v1816_v36, %v1817_v35  ;;  %v406_v39 = vsel %vm404_vm5, %v1817_v35, %v403_v33  ;;  %1694 = vmatmul.msk.f32.vlgmr.msrb.gmra.mxu1 %vm193_vm1, %v1692_v32  ;;  %v1725_v35 = vld [vmem:[%s2219_s0 + $0x68] sm:$0x3f]  ;;  %vm1274_vm5 = vcmask 621568  }
  0x98   : > { %427 = vmatpush.msra.mxu0 %v405_v38  ;;  %447 = vmatpush.msra.mxu1 %v406_v39  ;;  %v1728_v38 = vld [vmem:[%s2219_s0 + $0x70] sm:$0x3f] }
  0x99   : > { %1699 = vmatmul.msk.f32.vlgmr.msra.gmra.mxu0 %vm193_vm1, %v1698_v40 }
  0x9c   : > { %v1825_v43 = vpop.permute.xlu1 %1824  ;;  %v461_v44 = vpop.permute.xlu0 %460 }
  0x9d   : > { %v1827_v45 = vunpack.i.h.bf16 %v1825_v43  ;;  %v1826_v46 = vunpack.i.l.bf16 %v1825_v43  ;;  %v464_v47 = vsel %vm462_vm2, %v1822_v13, %v461_v44  ;;  %v2083_v48 = vpop.permute.xlu2 %1849  ;;  %vm1100_vm2 = vcmask 646144  }
  0x9e   : > { %505 = vmatpush.msra.mxu3 %v464_v47  ;;  %v1852_v62 = vunpack.i.h.bf16 %v2083_v48  ;;  %v1851_v63 = vunpack.i.l.bf16 %v2083_v48  ;;  %v1731_v47 = vld [vmem:[%s2219_s0 + $0x78] sm:$0x3f] }
  0x9f   : > { %v522_v50 = vsel %vm520_vm7, %v1827_v45, %v519_v23  ;;  %v521_v51 = vsel %vm520_vm7, %v1826_v46, %v1827_v45  ;;  %1703 = vmatmul.msk.f32.vlgmr.msra.gmra.mxu3 %vm193_vm1, %v2050_v16  ;;  %1700 = vmatmul.msk.f32.vlgmr.msra.gmra.mxu1 %vm193_vm1, %v1698_v40  ;;  %v1719_v16 = vld [vmem:[%s2219_s0 + $0x58] sm:$0x3f]  ;;  %vm1506_vm7 = vcmask 498688  }
  0xa0   : > { %563 = vmatpush.msrb.mxu1 %v522_v50  ;;  %543 = vmatpush.msrb.mxu0 %v521_v51  ;;  %v811_v9 = vsel %vm810_vm10, %v1851_v63, %v1852_v62 }
  0xa1   : > { %1705 = vmatmul.msk.f32.vlgmr.msrb.gmra.mxu0 %vm193_vm1, %v1704_v52 }
  0xa2   : > { %659 = vmatpush.msra.mxu0 %v637_v49 }
  0xa4   : > { %v577_v53 = vpop.permute.xlu1 %576  ;;  %v1830_v54 = vpop.permute.xlu0 %1829 }
  0xa5   : > { %v1832_v55 = vunpack.i.h.bf16 %v1830_v54  ;;  %v1831_v56 = vunpack.i.l.bf16 %v1830_v54  ;;  %v867_v57 = vpop.permute.xlu2 %866 }
  0xa7   : > { %v579_v59 = vsel %vm578_vm8, %v1831_v56, %v1832_v55  ;;  %v580_v60 = vsel %vm578_vm8, %v1832_v55, %v577_v53  ;;  %1706 = vmatmul.msk.f32.vlgmr.msrb.gmra.mxu1 %vm193_vm1, %v1704_v52  ;;  %v1734_v56 = vld [vmem:[%s2219_s0 + $0x80] sm:$0x3f]  ;;  %vm1448_vm8 = vcmask 506880  }
  0xa8   : > { %601 = vmatpush.msrb.mxu2 %v579_v59  ;;  %621 = vmatpush.msrb.mxu3 %v580_v60  ;;  %v1737_v59 = vld [vmem:[%s2219_s0 + $0x88] sm:$0x3f] }
  0xa9   : > { %1708 = vmatmul.msk.f32.vlgmr.msrb.gmra.mxu2 %vm193_vm1, %v1707_v58  ;;  %1709 = vmatmul.msk.f32.vlgmr.msrb.gmra.mxu3 %vm193_vm1, %v1707_v58 }
  0xaa   : > { %1711 = vmatmul.msk.f32.vlgmr.msra.gmra.mxu0 %vm193_vm1, %v1710_v61 }
  0xac   : > { %v1840_v0 = vpop.permute.xlu1 %1839  ;;  %v635_v1 = vpop.permute.xlu0 %634 }
  0xad   : > { %v1842_v2 = vunpack.i.h.bf16 %v1840_v0  ;;  %v1841_v3 = vunpack.i.l.bf16 %v1840_v0  ;;  %v638_v4 = vsel %vm636_vm6, %v1837_v41, %v635_v1  ;;  %v2106_v5 = vpop.permute.xlu2 %1864  ;;  %vm1390_vm6 = vcmask 515072  }
  0xae   : > { %679 = vmatpush.msra.mxu1 %v638_v4  ;;  %v1867_v19 = vunpack.i.h.bf16 %v2106_v5  ;;  %v1866_v20 = vunpack.i.l.bf16 %v2106_v5 }
  0xaf   : > { %v695_v7 = vsel %vm694_vm9, %v1841_v3, %v1842_v2  ;;  %v696_v8 = vsel %vm694_vm9, %v1842_v2, %v693_v37  ;;  %1712 = vmatmul.msk.f32.vlgmr.msra.gmra.mxu1 %vm193_vm1, %v1710_v61  ;;  %v1740_v3 = vld [vmem:[%s2219_s0 + $0x90] sm:$0x3f]  ;;  %vm1564_vm9 = vcmask 490496  }
  0xb0   : > { %717 = vmatpush.msra.mxu2 %v695_v7  ;;  %737 = vmatpush.msra.mxu3 %v696_v8  ;;  %v985_v29 = vsel %vm984_vm13, %v1866_v20, %v1867_v19  ;;  %v1614_v8 = vld [vmem:[%s2220_s1] sm:$0x3f] }
  0xb1   : > { %1714 = vmatmul.msk.f32.vlgmr.msra.gmra.mxu2 %vm193_vm1, %v1713_v6  ;;  %1715 = vmatmul.msk.f32.vlgmr.msra.gmra.mxu3 %vm193_vm1, %v1713_v6 }
  0xb2   : > { %833 = vmatpush.msrb.mxu2 %v811_v9  ;;  %v1951_v9 = vmov 0  }
  0xb3   : > { %1918 = vset.pattern.permute.xlu0 %v1951_v9 }
  0xb4   : > { %v751_v10 = vpop.permute.xlu1 %750  ;;  %v1845_v11 = vpop.permute.xlu0 %1844  ;;  %1617 = vperm.xlu0 %1918, %v1614_v8  }
  0xb5   : > { %v1847_v12 = vunpack.i.h.bf16 %v1845_v11  ;;  %v1846_v13 = vunpack.i.l.bf16 %v1845_v11  ;;  %v1041_v14 = vpop.permute.xlu2 %1040 }
  0xb7   : > { %v753_v17 = vsel %vm752_vm11, %v1846_v13, %v1847_v12  ;;  %v754_v18 = vsel %vm752_vm11, %v1847_v12, %v751_v10 }
  0xb8   : > { %775 = vmatpush.msrb.mxu0 %v753_v17  ;;  %795 = vmatpush.msrb.mxu1 %v754_v18  ;;  %v1746_v17 = vld [vmem:[%s2219_s0 + $0xa0] sm:$0x3f] }
  0xb9   : > { %1717 = vmatmul.msk.f32.vlgmr.msrb.gmra.mxu0 %vm193_vm1, %v1716_v15  ;;  %1720 = vmatmul.msk.f32.vlgmr.msrb.gmra.mxu2 %vm193_vm1, %v1719_v16 }
  0xba   : > { %1718 = vmatmul.msk.f32.vlgmr.msrb.gmra.mxu1 %vm193_vm1, %v1716_v15 }
  0xbc   : > { %v1855_v21 = vpop.permute.xlu1 %1854  ;;  %v809_v22 = vpop.permute.xlu0 %808 }
  0xbd   : > { %v1857_v23 = vunpack.i.h.bf16 %v1855_v21  ;;  %v1856_v24 = vunpack.i.l.bf16 %v1855_v21  ;;  %v812_v25 = vsel %vm810_vm10, %v1852_v62, %v809_v22  ;;  %v2132_v30 = vpop.permute.xlu2 %1879 }
  0xbe   : > { %853 = vmatpush.msrb.mxu3 %v812_v25  ;;  %v1882_v40 = vunpack.i.h.bf16 %v2132_v30  ;;  %v1881_v41 = vunpack.i.l.bf16 %v2132_v30 }
  0xbf   : > { %1721 = vmatmul.msk.f32.vlgmr.msrb.gmra.mxu3 %vm193_vm1, %v1719_v16  ;;  %v869_v27 = vsel %vm868_vm12, %v1856_v24, %v1857_v23  ;;  %v870_v28 = vsel %vm868_vm12, %v1857_v23, %v867_v57 }
  0xc0   : > { %891 = vmatpush.msra.mxu0 %v869_v27  ;;  %911 = vmatpush.msra.mxu1 %v870_v28  ;;  %v1159_v50 = vsel %vm1158_vm0, %v1881_v41, %v1882_v40 }
  0xc1   : > { %1723 = vmatmul.msk.f32.vlgmr.msra.gmra.mxu0 %vm193_vm1, %v1722_v26 }
  0xc2   : > { %1724 = vmatmul.msk.f32.vlgmr.msra.gmra.mxu1 %vm193_vm1, %v1722_v26  ;;  %1007 = vmatpush.msrb.mxu0 %v985_v29  ;;  %v1749_v26 = vld [vmem:[%s2219_s0 + $0xa8] sm:$0x3f] }
  0xc4   : > { %v925_v31 = vpop.permute.xlu1 %924  ;;  %v1860_v32 = vpop.permute.xlu0 %1859 }
  0xc5   : > { %v1862_v33 = vunpack.i.h.bf16 %v1860_v32  ;;  %v1861_v34 = vunpack.i.l.bf16 %v1860_v32  ;;  %v1215_v39 = vpop.permute.xlu2 %1214 }
  0xc7   : > { %v927_v36 = vsel %vm926_vm14, %v1861_v34, %v1862_v33  ;;  %v928_v37 = vsel %vm926_vm14, %v1862_v33, %v925_v31  ;;  %v1752_v34 = vld [vmem:[%s2219_s0 + $0xb0] sm:$0x3f] }
  0xc8   : > { %949 = vmatpush.msra.mxu2 %v927_v36  ;;  %969 = vmatpush.msra.mxu3 %v928_v37  ;;  %v1755_v37 = vld [vmem:[%s2219_s0 + $0xb8] sm:$0x3f] }
  0xc9   : > { %1726 = vmatmul.msk.f32.vlgmr.msra.gmra.mxu2 %vm193_vm1, %v1725_v35  ;;  %1727 = vmatmul.msk.f32.vlgmr.msra.gmra.mxu3 %vm193_vm1, %v1725_v35 }
  0xca   : > { %1729 = vmatmul.msk.f32.vlgmr.msrb.gmra.mxu0 %vm193_vm1, %v1728_v38 }
  0xcc   : > { %v1870_v42 = vpop.permute.xlu1 %1869  ;;  %v983_v43 = vpop.permute.xlu0 %982 }
  0xcd   : > { %v1872_v44 = vunpack.i.h.bf16 %v1870_v42  ;;  %v1871_v45 = vunpack.i.l.bf16 %v1870_v42  ;;  %v986_v46 = vsel %vm984_vm13, %v1867_v19, %v983_v43  ;;  %v2155_v51 = vpop.permute.xlu2 %1894 }
  0xce   : > { %1027 = vmatpush.msrb.mxu1 %v986_v46  ;;  %v1897_v60 = vunpack.i.h.bf16 %v2155_v51  ;;  %v1896_v61 = vunpack.i.l.bf16 %v2155_v51  ;;  %v277_v51 = vpop.f32.mrf.mxu3 }
  0xcf   : > { %v1043_v48 = vsel %vm1042_vm15, %v1871_v45, %v1872_v44  ;;  %v1044_v49 = vsel %vm1042_vm15, %v1872_v44, %v1041_v14  ;;  %1730 = vmatmul.msk.f32.vlgmr.msrb.gmra.mxu1 %vm193_vm1, %v1728_v38  ;;  %v1743_v14 = vld [vmem:[%s2219_s0 + $0x98] sm:$0x3f]  ;;  %v1758_v44 = vld [vmem:[%s2219_s0 + $0xc0] sm:$0x3f] }
  0xd0   : > { %1065 = vmatpush.msrb.mxu2 %v1043_v48  ;;  %1085 = vmatpush.msrb.mxu3 %v1044_v49  ;;  %v1333_v7 = vsel %vm1332_vm4, %v1896_v61, %v1897_v60  ;;  %v257_v49 = vpop.f32.mrf.mxu2 }
  0xd1   : > { %1732 = vmatmul.msk.f32.vlgmr.msrb.gmra.mxu2 %vm193_vm1, %v1731_v47  ;;  %1733 = vmatmul.msk.f32.vlgmr.msrb.gmra.mxu3 %vm193_vm1, %v1731_v47 }
  0xd2   : > { %1181 = vmatpush.msra.mxu2 %v1159_v50 }
  0xd4   : > { %v1099_v52 = vpop.permute.xlu1 %1098  ;;  %v1875_v53 = vpop.permute.xlu0 %1874 }
  0xd5   : > { %v1877_v54 = vunpack.i.h.bf16 %v1875_v53  ;;  %v1876_v55 = vunpack.i.l.bf16 %v1875_v53  ;;  %v1389_v4 = vpop.permute.xlu2 %1388 }
  0xd7   : > { %v1101_v57 = vsel %vm1100_vm2, %v1876_v55, %v1877_v54  ;;  %v1102_v58 = vsel %vm1100_vm2, %v1877_v54, %v1099_v52 }
  0xd8   : > { %1123 = vmatpush.msra.mxu0 %v1101_v57  ;;  %1143 = vmatpush.msra.mxu1 %v1102_v58 }
  0xd9   : > { %1735 = vmatmul.msk.f32.vlgmr.msra.gmra.mxu0 %vm193_vm1, %v1734_v56  ;;  %1736 = vmatmul.msk.f32.vlgmr.msra.gmra.mxu1 %vm193_vm1, %v1734_v56 }
  0xda   : > { %1738 = vmatmul.msk.f32.vlgmr.msra.gmra.mxu2 %vm193_vm1, %v1737_v59 }
  0xdc   : > { %v1885_v62 = vpop.permute.xlu1 %1884  ;;  %v1157_v63 = vpop.permute.xlu0 %1156 }
  0xdd   : > { %v1887_v0 = vunpack.i.h.bf16 %v1885_v62  ;;  %v1886_v1 = vunpack.i.l.bf16 %v1885_v62  ;;  %v1160_v2 = vsel %vm1158_vm0, %v1882_v40, %v1157_v63  ;;  %v1910_v18 = vpop.permute.xlu2 %1909 }
  0xde   : > { %1201 = vmatpush.msra.mxu3 %v1160_v2  ;;  %v1912_v19 = vunpack.i.h.bf16 %v1910_v18  ;;  %v1911_v20 = vunpack.i.l.bf16 %v1910_v18 }
  0xdf   : > { %1739 = vmatmul.msk.f32.vlgmr.msra.gmra.mxu3 %vm193_vm1, %v1737_v59  ;;  %v1217_v5 = vsel %vm1216_vm3, %v1886_v1, %v1887_v0  ;;  %v1218_v6 = vsel %vm1216_vm3, %v1887_v0, %v1215_v39 }
  0xe0   : > { %1239 = vmatpush.msrb.mxu0 %v1217_v5  ;;  %1259 = vmatpush.msrb.mxu1 %v1218_v6  ;;  %v1507_v29 = vsel %vm1506_vm7, %v1911_v20, %v1912_v19 }
  0xe1   : > { %1741 = vmatmul.msk.f32.vlgmr.msrb.gmra.mxu0 %vm193_vm1, %v1740_v3  ;;  %1742 = vmatmul.msk.f32.vlgmr.msrb.gmra.mxu1 %vm193_vm1, %v1740_v3 }
  0xe2   : > { %1355 = vmatpush.msra.mxu0 %v1333_v7 }
  0xe4   : > { %v1273_v10 = vpop.permute.xlu1 %1272  ;;  %v1890_v11 = vpop.permute.xlu0 %1889 }
  0xe5   : > { %v1892_v12 = vunpack.i.h.bf16 %v1890_v11  ;;  %v1891_v13 = vunpack.i.l.bf16 %v1890_v11  ;;  %v1563_v38 = vpop.permute.xlu2 %1562 }
  0xe7   : > { %v1275_v15 = vsel %vm1274_vm5, %v1891_v13, %v1892_v12  ;;  %v1276_v16 = vsel %vm1274_vm5, %v1892_v12, %v1273_v10 }
  0xe8   : > { %1297 = vmatpush.msrb.mxu2 %v1275_v15  ;;  %1317 = vmatpush.msrb.mxu3 %v1276_v16 }
  0xe9   : > { %1744 = vmatmul.msk.f32.vlgmr.msrb.gmra.mxu2 %vm193_vm1, %v1743_v14  ;;  %1745 = vmatmul.msk.f32.vlgmr.msrb.gmra.mxu3 %vm193_vm1, %v1743_v14 }
  0xea   : > { %1747 = vmatmul.msk.f32.vlgmr.msra.gmra.mxu0 %vm193_vm1, %v1746_v17 }
  0xec   : > { %v1900_v21 = vpop.permute.xlu1 %1899  ;;  %v1331_v22 = vpop.permute.xlu0 %1330 }
  0xed   : > { %v1902_v23 = vunpack.i.h.bf16 %v1900_v21  ;;  %v1901_v24 = vunpack.i.l.bf16 %v1900_v21  ;;  %v1334_v25 = vsel %vm1332_vm4, %v1897_v60, %v1331_v22 }
  0xee   : > { %1375 = vmatpush.msra.mxu1 %v1334_v25 }
  0xef   : > { %v1391_v27 = vsel %vm1390_vm6, %v1901_v24, %v1902_v23  ;;  %v1392_v28 = vsel %vm1390_vm6, %v1902_v23, %v1389_v4  ;;  %1748 = vmatmul.msk.f32.vlgmr.msra.gmra.mxu1 %vm193_vm1, %v1746_v17 }
  0xf0   : > { %1413 = vmatpush.msra.mxu2 %v1391_v27  ;;  %1433 = vmatpush.msra.mxu3 %v1392_v28 }
  0xf1   : > { %1750 = vmatmul.msk.f32.vlgmr.msra.gmra.mxu2 %vm193_vm1, %v1749_v26  ;;  %1751 = vmatmul.msk.f32.vlgmr.msra.gmra.mxu3 %vm193_vm1, %v1749_v26 }
  0xf2   : > { %1529 = vmatpush.msrb.mxu2 %v1507_v29 }
  0xf4   : > { %v1447_v30 = vpop.permute.xlu1 %1446  ;;  %v1905_v31 = vpop.permute.xlu0 %1904 }
  0xf5   : > { %v1907_v32 = vunpack.i.h.bf16 %v1905_v31  ;;  %v1906_v33 = vunpack.i.l.bf16 %v1905_v31 }
  0xf6   : > { %v371_v53 = vpop.f32.mrf.mxu2 }
  0xf7   : > { %v1449_v35 = vsel %vm1448_vm8, %v1906_v33, %v1907_v32  ;;  %v1450_v36 = vsel %vm1448_vm8, %v1907_v32, %v1447_v30 }
  0xf8   : > { %1471 = vmatpush.msrb.mxu0 %v1449_v35  ;;  %1491 = vmatpush.msrb.mxu1 %v1450_v36 }
  0xf9   : > { %1753 = vmatmul.msk.f32.vlgmr.msrb.gmra.mxu0 %vm193_vm1, %v1752_v34  ;;  %1754 = vmatmul.msk.f32.vlgmr.msrb.gmra.mxu1 %vm193_vm1, %v1752_v34 }
  0xfa   : > { %1756 = vmatmul.msk.f32.vlgmr.msrb.gmra.mxu2 %vm193_vm1, %v1755_v37 }
  0xfb   : > { %v391_v55 = vpop.f32.mrf.mxu3 }
  0xfc   : > { %v1915_v39 = vpop.permute.xlu1 %1914 }
  0xfd   : > { %v1505_v40 = vpop.permute.xlu0 %1504  ;;  %v1917_v41 = vunpack.i.h.bf16 %v1915_v39  ;;  %v1916_v42 = vunpack.i.l.bf16 %v1915_v39 }
  0xfe   : > { %v1508_v43 = vsel %vm1506_vm7, %v1912_v19, %v1505_v40 }
  0xff   : > { %1549 = vmatpush.msrb.mxu3 %v1508_v43  ;;  %v1565_v45 = vsel %vm1564_vm9, %v1916_v42, %v1917_v41  ;;  %v1566_v46 = vsel %vm1564_vm9, %v1917_v41, %v1563_v38 }
 0x100   : > { %1757 = vmatmul.msk.f32.vlgmr.msrb.gmra.mxu3 %vm193_vm1, %v1755_v37  ;;  %1587 = vmatpush.msra.mxu0 %v1565_v45 }
 0x101   : > { %1607 = vmatpush.msra.mxu1 %v1566_v46  ;;  %1759 = vmatmul.msk.f32.vlgmr.msra.gmra.mxu0 %vm193_vm1, %v1758_v44 }
 0x102   : > { %1760 = vmatmul.msk.f32.vlgmr.msra.gmra.mxu1 %vm193_vm1, %v1758_v44 }
 0x106   : > { %v214_v47 = vpop.f32.mrf.mxu0  ;;  %v487_v57 = vpop.f32.mrf.mxu2 }
 0x107   : > { %v258_v61 = vadd.f32 %v257_v49, %v214_v47 }
 0x10c   : > { %v234_v48 = vpop.f32.mrf.mxu1 }
 0x10d   : > { %v278_v1 = vadd.f32 %v277_v51, %v234_v48 }
 0x10e   : > { %v313_v50 = vpop.f32.mrf.mxu0 }
 0x10f   : > { %v336_v0 = vadd.f32 %v313_v50, %v258_v61 }
 0x111   : > { %v394_v2 = vadd.f32 %v371_v53, %v336_v0 }
 0x114   : > { %v333_v52 = vpop.f32.mrf.mxu1 }
 0x115   : > { %v337_v5 = vadd.f32 %v333_v52, %v278_v1 }
 0x116   : > { %v429_v54 = vpop.f32.mrf.mxu0 }
 0x117   : > { %v452_v8 = vadd.f32 %v429_v54, %v394_v2  ;;  %v395_v9 = vadd.f32 %v391_v55, %v337_v5 }
 0x119   : > { %v510_v10 = vadd.f32 %v487_v57, %v452_v8 }
 0x11c   : > { %v449_v56 = vpop.f32.mrf.mxu1 }
 0x11d   : > { %v453_v11 = vadd.f32 %v449_v56, %v395_v9 }
 0x11e   : > { %v545_v58 = vpop.f32.mrf.mxu0 }
 0x11f   : > { %v568_v14 = vadd.f32 %v545_v58, %v510_v10 }
 0x122   : > { %v507_v59 = vpop.f32.mrf.mxu3 }
 0x123   : > { %v511_v17 = vadd.f32 %v507_v59, %v453_v11 }
 0x124   : > { %v565_v60 = vpop.f32.mrf.mxu1 }
 0x125   : > { %v569_v19 = vadd.f32 %v565_v60, %v511_v17 }
 0x126   : > { %v1618_v11 = vpop.permute.xlu0 %1617 }
 0x127   : > { %v661_v63 = vpop.f32.mrf.mxu0 }
 0x12c   : > { %v603_v62 = vpop.f32.mrf.mxu2  ;;  %v623_v3 = vpop.f32.mrf.mxu3 }
 0x12d   : > { %v681_v4 = vpop.f32.mrf.mxu1  ;;  %v626_v18 = vadd.f32 %v603_v62, %v568_v14  ;;  %v627_v25 = vadd.f32 %v623_v3, %v569_v19 }
 0x12f   : > { %v684_v22 = vadd.f32 %v661_v63, %v626_v18  ;;  %v685_v27 = vadd.f32 %v681_v4, %v627_v25 }
 0x134   : > { %v719_v6 = vpop.f32.mrf.mxu2  ;;  %v739_v12 = vpop.f32.mrf.mxu3 }
 0x135   : > { %v742_v26 = vadd.f32 %v719_v6, %v684_v22  ;;  %v743_v31 = vadd.f32 %v739_v12, %v685_v27 }
 0x136   : > { %v777_v7 = vpop.f32.mrf.mxu0 }
 0x137   : > { %v797_v13 = vpop.f32.mrf.mxu1  ;;  %v800_v30 = vadd.f32 %v777_v7, %v742_v26 }
 0x138   : > { %v801_v35 = vadd.f32 %v797_v13, %v743_v31 }
 0x13c   : > { %v835_v15 = vpop.f32.mrf.mxu2 }
 0x13d   : > { %v858_v32 = vadd.f32 %v835_v15, %v800_v30 }
 0x13e   : > { %v893_v16 = vpop.f32.mrf.mxu0 }
 0x13f   : > { %v913_v21 = vpop.f32.mrf.mxu1  ;;  %v916_v36 = vadd.f32 %v893_v16, %v858_v32 }
 0x142   : > { %v855_v20 = vpop.f32.mrf.mxu3 }
 0x143   : > { %v859_v37 = vadd.f32 %v855_v20, %v801_v35 }
 0x145   : > { %v917_v41 = vadd.f32 %v913_v21, %v859_v37 }
 0x147   : > { %v1009_v24 = vpop.f32.mrf.mxu0 }
 0x14c   : > { %v951_v23 = vpop.f32.mrf.mxu2  ;;  %v971_v28 = vpop.f32.mrf.mxu3 }
 0x14d   : > { %v1029_v29 = vpop.f32.mrf.mxu1  ;;  %v974_v38 = vadd.f32 %v951_v23, %v916_v36  ;;  %v975_v45 = vadd.f32 %v971_v28, %v917_v41 }
 0x14f   : > { %v1032_v42 = vadd.f32 %v1009_v24, %v974_v38  ;;  %v1033_v49 = vadd.f32 %v1029_v29, %v975_v45 }
 0x154   : > { %v1067_v33 = vpop.f32.mrf.mxu2  ;;  %v1087_v39 = vpop.f32.mrf.mxu3 }
 0x155   : > { %v1090_v46 = vadd.f32 %v1067_v33, %v1032_v42  ;;  %v1091_v51 = vadd.f32 %v1087_v39, %v1033_v49 }
 0x156   : > { %v1125_v34 = vpop.f32.mrf.mxu0  ;;  %v1145_v40 = vpop.f32.mrf.mxu1 }
 0x157   : > { %v1148_v50 = vadd.f32 %v1125_v34, %v1090_v46  ;;  %v1149_v55 = vadd.f32 %v1145_v40, %v1091_v51 }
 0x15d   : > { %v1183_v43 = vpop.f32.mrf.mxu2 }
 0x15e   : > { %v1241_v44 = vpop.f32.mrf.mxu0  ;;  %v1261_v48 = vpop.f32.mrf.mxu1  ;;  %v1206_v52 = vadd.f32 %v1183_v43, %v1148_v50 }
 0x160   : > { %v1264_v56 = vadd.f32 %v1241_v44, %v1206_v52 }
 0x162   : > { %v1203_v47 = vpop.f32.mrf.mxu3 }
 0x163   : > { %v1207_v59 = vadd.f32 %v1203_v47, %v1149_v55 }
 0x165   : > { %v1265_v62 = vadd.f32 %v1261_v48, %v1207_v59 }
 0x167   : > { %v1357_v54 = vpop.f32.mrf.mxu0 }
 0x16c   : > { %v1299_v53 = vpop.f32.mrf.mxu2  ;;  %v1319_v57 = vpop.f32.mrf.mxu3 }
 0x16d   : > { %v1377_v58 = vpop.f32.mrf.mxu1  ;;  %v1322_v60 = vadd.f32 %v1299_v53, %v1264_v56  ;;  %v1323_v1 = vadd.f32 %v1319_v57, %v1265_v62 }
 0x16f   : > { %v1380_v63 = vadd.f32 %v1357_v54, %v1322_v60  ;;  %v1381_v5 = vadd.f32 %v1377_v58, %v1323_v1 }
 0x174   : > { %v1415_v61 = vpop.f32.mrf.mxu2  ;;  %v1435_v3 = vpop.f32.mrf.mxu3 }
 0x175   : > { %v1438_v2 = vadd.f32 %v1415_v61, %v1380_v63  ;;  %v1439_v7 = vadd.f32 %v1435_v3, %v1381_v5 }
 0x176   : > { %v1473_v0 = vpop.f32.mrf.mxu0  ;;  %v1493_v4 = vpop.f32.mrf.mxu1 }
 0x177   : > { %v1496_v6 = vadd.f32 %v1473_v0, %v1438_v2  ;;  %v1497_v13 = vadd.f32 %v1493_v4, %v1439_v7 }
 0x17d   : > { %v1531_v8 = vpop.f32.mrf.mxu2 }
 0x17e   : > { %v1554_v9 = vadd.f32 %v1531_v8, %v1496_v6  ;;  %v1589_v10 = vpop.f32.mrf.mxu0 }
 0x17f   : > { %v1609_v16 = vpop.f32.mrf.mxu1 }
 0x180   : > { %v1612_v12 = vadd.f32 %v1589_v10, %v1554_v9 }
 0x182   : > { %v1620_v14 = vadd.f32 %v1618_v11, %v1612_v12 }
 0x183   : > { %v1551_v15 = vpop.f32.mrf.mxu3 }
 0x184   : > { %v1555_v17 = vadd.f32 %v1551_v15, %v1497_v13  ;;  %1622 = vst [vmem:[%s170_s22] sm:$0x3f] %v1620_v14 }
 0x186   : > { %v1613_v18 = vadd.f32 %v1609_v16, %v1555_v17 }
 0x188   : > { %v1621_v19 = vadd.f32 %v1618_v11, %v1613_v18 }
 0x18a   : > { %1623 = vst [vmem:[%s170_s22 + $0x8] sm:$0x3f] %v1621_v19 }
 0x18b PF: > { %s13_s12 = sadd.s32 1, %s1925_s12  }
 0x18c   : > { %p10_p4 = scmp.ge.s32.totalorder %s13_s12, 4  }
 0x18e   :  { %12 = sbr.rel (!%p10_p4) target bundleno = 1 (0x1), region = 86 }

</bundles_post_ra>
